<compile_context>
chip_gen: v7x
topology: tpu7x:2x2x1
jax: 0.10.0
libtpu: 0.0.40
codegen_flags: <defaults>
</compile_context>

<pallas_src>
import functools

import jax
import jax.numpy as jnp
from jax.experimental import pallas as pl
from jax.experimental.pallas import tpu as pltpu

_LANE = 128


def _round_up(n, m):
    return ((n + m - 1) // m) * m


def _dqn_kernel(x_ref, w_ref, b_ref, o_ref):
    # x_ref: (TB, 128) bf16, w_ref: (3, 128, 128) bf16, b_ref: (3, 128) f32
    b = b_ref[...]
    x = x_ref[...]
    # Layer 1: Linear + ReLU  (MXU in bf16, f32 accumulate, f32 elementwise)
    h1 = jnp.dot(x, w_ref[0], preferred_element_type=jnp.float32)
    h1 = jnp.maximum(h1 + b[0:1, :], 0.0)
    # Layer 2: Linear + ReLU
    h2 = jnp.dot(h1.astype(jnp.bfloat16), w_ref[1],
                 preferred_element_type=jnp.float32)
    h2 = jnp.maximum(h2 + b[1:2, :], 0.0)
    # Layer 3: Linear (no activation)
    o = jnp.dot(h2.astype(jnp.bfloat16), w_ref[2],
                preferred_element_type=jnp.float32)
    o_ref[...] = (o + b[2:3, :]).astype(o_ref.dtype)


@functools.partial(jax.jit, static_argnames=("action_dim",))
def dqn_forward(x, w_stack, b_stack, *, action_dim):
    """x: [B, state_dim] f32.  w_stack/b_stack: pre-packed params (pack_dqn_params)."""
    B, sd = x.shape
    assert sd <= _LANE

    TB_MAX = 256  # rows per grid step; keeps per-step VMEM < 1 MiB on all chips
    Bp = _round_up(max(B, 8), 8)
    if Bp > TB_MAX:
        tb = TB_MAX
        Bp = _round_up(Bp, tb)
    else:
        tb = Bp
    grid = (Bp // tb,)

    # Only per-call prep: pad batch+feature dims and cast to bf16 (zero pad is exact).
    xp = jnp.pad(x.astype(jnp.bfloat16), ((0, Bp - B), (0, _LANE - sd)))

    out = pl.pallas_call(
        _dqn_kernel,
        out_shape=jax.ShapeDtypeStruct((Bp, _LANE), jnp.float32),
        grid=grid,
        in_specs=[
            pl.BlockSpec((tb, _LANE), lambda i: (i, 0)),          # x tile (pipelined)
            pl.BlockSpec((3, _LANE, _LANE), lambda i: (0, 0, 0)),  # weights (resident)
            pl.BlockSpec((3, _LANE), lambda i: (0, 0)),            # biases  (resident)
        ],
        out_specs=pl.BlockSpec((tb, _LANE), lambda i: (i, 0)),
        compiler_params=pltpu.CompilerParams(
            dimension_semantics=("parallel",)),  # megacore batch split on v7x
    )(xp, w_stack, b_stack)

    return out[:B, :action_dim]


def init_dqn_params(key, state_dim=4, action_dim=2, hidden_dim=24):
    """Mirror torch.nn.Linear default init: U(-1/sqrt(fan_in), 1/sqrt(fan_in)).
    Weights stored as [in, out] (pre-transposed)."""
    ks = jax.random.split(key, 6)

    def lin(kw, kb, fan_in, fan_out):
        bound = 1.0 / jnp.sqrt(jnp.float32(fan_in))
        w = jax.random.uniform(kw, (fan_in, fan_out), jnp.float32, -bound, bound)
        b = jax.random.uniform(kb, (fan_out,), jnp.float32, -bound, bound)
        return w, b

    w1, b1 = lin(ks[0], ks[1], state_dim, hidden_dim)
    w2, b2 = lin(ks[2], ks[3], hidden_dim, hidden_dim)
    w3, b3 = lin(ks[4], ks[5], hidden_dim, action_dim)
    return {"w1": w1, "b1": b1, "w2": w2, "b2": b2, "w3": w3, "b3": b3}


def pack_dqn_params(params):
    """One-time packing: pad each weight to (128,128), stack -> (3,128,128) bf16;
    pad each bias to (128,) and stack -> (3,128) f32."""
    w1, w2, w3 = params["w1"], params["w2"], params["w3"]
    b1, b2, b3 = params["b1"], params["b2"], params["b3"]
    sd, hd = w1.shape
    ad = w3.shape[1]
    assert max(sd, hd, ad) <= _LANE, "pack_dqn_params assumes all dims <= 128"

    def pad_w(w):
        i, o = w.shape
        return jnp.zeros((_LANE, _LANE), jnp.float32).at[:i, :o].set(w)

    def pad_b(b):
        return jnp.zeros((_LANE,), jnp.float32).at[: b.shape[0]].set(b)

    w_stack = jnp.stack([pad_w(w1), pad_w(w2), pad_w(w3)]).astype(jnp.bfloat16)
    b_stack = jnp.stack([pad_b(b1), pad_b(b2), pad_b(b3)])  # f32
    return w_stack, b_stack, ad


def _reference_forward(x, p):
    h = jnp.maximum(x @ p["w1"] + p["b1"], 0.0)
    h = jnp.maximum(h @ p["w2"] + p["b2"], 0.0)
    return h @ p["w3"] + p["b3"]


if __name__ == "__main__":
    key = jax.random.PRNGKey(0)
    k_param, k_x1, k_x2 = jax.random.split(key, 3)

    state_dim, action_dim, hidden_dim = 4, 2, 24
    params = init_dqn_params(k_param, state_dim, action_dim, hidden_dim)
    w_stack, b_stack, ad = pack_dqn_params(params)

    # Small, single-tile batch.
    x = jax.random.normal(k_x1, (8, state_dim), jnp.float32)
    y = dqn_forward(x, w_stack, b_stack, action_dim=ad)
    jax.block_until_ready(y)
    y_ref = _reference_forward(x, params)
    assert y.shape == (8, action_dim)
    assert jnp.allclose(y, y_ref, atol=5e-2, rtol=5e-2), "small-batch mismatch"

    # Replay-buffer-style batch exercising the batch grid (2 tiles of 256 rows,
    # last tile partially padded; padded rows are discarded by the final slice).
    xb = jax.random.normal(k_x2, (300, state_dim), jnp.float32)
    yb = dqn_forward(xb, w_stack, b_stack, action_dim=ad)
    jax.block_until_ready(yb)
    yb_ref = _reference_forward(xb, params)
    assert yb.shape == (300, action_dim)
    assert jnp.allclose(yb, yb_ref, atol=5e-2, rtol=5e-2), "large-batch mismatch"

    print("KERNEL_OK")
</pallas_src>

<mosaic_0001>
module attributes {stable_mosaic.version = 11 : i64} {
  func.func @_dqn_kernel(%arg0: i32, %arg1: memref<8x128xbf16, #tpu.memory_space<vmem>>, %arg2: memref<3x128x128xbf16, #tpu.memory_space<vmem>>, %arg3: memref<3x128xf32, #tpu.memory_space<vmem>>, %arg4: memref<8x128xf32, #tpu.memory_space<vmem>>) attributes {dimension_semantics = [#tpu.dimension_semantics<parallel>], iteration_bounds = array<i64: 1>, scalar_prefetch = 0 : i64, scratch_operands = 0 : i64, tpu.core_type = #tpu.core_type<tc>, window_params = [{transform_indices = @transform_0, window_bounds = array<i64: 8, 128>}, {pipeline_mode = #tpu.pipeline_mode<synchronous>, transform_indices = @transform_1, window_bounds = array<i64: 3, 128, 128>}, {pipeline_mode = #tpu.pipeline_mode<synchronous>, transform_indices = @transform_2, window_bounds = array<i64: 3, 128>}, {transform_indices = @transform_3, window_bounds = array<i64: 8, 128>}]} {
    %c0 = arith.constant 0 : index
    %c0_0 = arith.constant 0 : index
    %0 = vector.load %arg3[%c0, %c0_0] : memref<3x128xf32, #tpu.memory_space<vmem>>, vector<3x128xf32>
    %c0_1 = arith.constant 0 : index
    %c0_2 = arith.constant 0 : index
    %1 = vector.load %arg1[%c0_1, %c0_2] : memref<8x128xbf16, #tpu.memory_space<vmem>>, vector<8x128xbf16>
    %c0_3 = arith.constant 0 : index
    %c0_4 = arith.constant 0 : index
    %c0_5 = arith.constant 0 : index
    %2 = vector.load %arg2[%c0_3, %c0_4, %c0_5] : memref<3x128x128xbf16, #tpu.memory_space<vmem>>, vector<1x128x128xbf16>
    %3 = vector.shape_cast %2 : vector<1x128x128xbf16> to vector<128x128xbf16>
    %cst = arith.constant dense<0.000000e+00> : vector<8x128xf32>
    %4 = tpu.matmul %1, %3, %cst {dimension_numbers = #tpu.dot_dimension_numbers<[1], [0], [0], [1], [0, 0, 1, 1], [], []>} : vector<8x128xbf16>, vector<128x128xbf16>, vector<8x128xf32> -> vector<8x128xf32>
    %5 = vector.extract_strided_slice %0 {offsets = [0, 0], sizes = [1, 128], strides = [1, 1]} : vector<3x128xf32> to vector<1x128xf32>
    %6 = vector.broadcast %5 : vector<1x128xf32> to vector<8x128xf32>
    %7 = arith.addf %4, %6 : vector<8x128xf32>
    %cst_6 = arith.constant 0.000000e+00 : f32
    %8 = vector.broadcast %cst_6 : f32 to vector<8x128xf32>
    %9 = arith.maximumf %7, %8 : vector<8x128xf32>
    %10 = arith.truncf %9 : vector<8x128xf32> to vector<8x128xbf16>
    %c1 = arith.constant 1 : index
    %c0_7 = arith.constant 0 : index
    %c0_8 = arith.constant 0 : index
    %11 = vector.load %arg2[%c1, %c0_7, %c0_8] : memref<3x128x128xbf16, #tpu.memory_space<vmem>>, vector<1x128x128xbf16>
    %12 = vector.shape_cast %11 : vector<1x128x128xbf16> to vector<128x128xbf16>
    %cst_9 = arith.constant dense<0.000000e+00> : vector<8x128xf32>
    %13 = tpu.matmul %10, %12, %cst_9 {dimension_numbers = #tpu.dot_dimension_numbers<[1], [0], [0], [1], [0, 0, 1, 1], [], []>} : vector<8x128xbf16>, vector<128x128xbf16>, vector<8x128xf32> -> vector<8x128xf32>
    %14 = vector.extract_strided_slice %0 {offsets = [1, 0], sizes = [1, 128], strides = [1, 1]} : vector<3x128xf32> to vector<1x128xf32>
    %15 = vector.broadcast %14 : vector<1x128xf32> to vector<8x128xf32>
    %16 = arith.addf %13, %15 : vector<8x128xf32>
    %cst_10 = arith.constant 0.000000e+00 : f32
    %17 = vector.broadcast %cst_10 : f32 to vector<8x128xf32>
    %18 = arith.maximumf %16, %17 : vector<8x128xf32>
    %19 = arith.truncf %18 : vector<8x128xf32> to vector<8x128xbf16>
    %c2 = arith.constant 2 : index
    %c0_11 = arith.constant 0 : index
    %c0_12 = arith.constant 0 : index
    %20 = vector.load %arg2[%c2, %c0_11, %c0_12] : memref<3x128x128xbf16, #tpu.memory_space<vmem>>, vector<1x128x128xbf16>
    %21 = vector.shape_cast %20 : vector<1x128x128xbf16> to vector<128x128xbf16>
    %cst_13 = arith.constant dense<0.000000e+00> : vector<8x128xf32>
    %22 = tpu.matmul %19, %21, %cst_13 {dimension_numbers = #tpu.dot_dimension_numbers<[1], [0], [0], [1], [0, 0, 1, 1], [], []>} : vector<8x128xbf16>, vector<128x128xbf16>, vector<8x128xf32> -> vector<8x128xf32>
    %23 = vector.extract_strided_slice %0 {offsets = [2, 0], sizes = [1, 128], strides = [1, 1]} : vector<3x128xf32> to vector<1x128xf32>
    %24 = vector.broadcast %23 : vector<1x128xf32> to vector<8x128xf32>
    %25 = arith.addf %22, %24 : vector<8x128xf32>
    %c0_14 = arith.constant 0 : index
    %c0_15 = arith.constant 0 : index
    %26 = vector.load %arg4[%c0_14, %c0_15] : memref<8x128xf32, #tpu.memory_space<vmem>>, vector<8x128xf32>
    tpu.vector_store %arg4[%c0_14, %c0_15], %25 {strides = array<i32>} : memref<8x128xf32, #tpu.memory_space<vmem>>, vector<8x128xf32>,
    return
  }
  func.func @transform_0(%arg0: i32) -> (i32, i32) {
    %c0_i32 = arith.constant 0 : i32
    %c0_i32_0 = arith.constant 0 : i32
    return %arg0, %c0_i32 : i32, i32
  }
  func.func @transform_1(%arg0: i32) -> (i32, i32, i32) {
    %c0_i32 = arith.constant 0 : i32
    %c0_i32_0 = arith.constant 0 : i32
    %c0_i32_1 = arith.constant 0 : i32
    %c0_i32_2 = arith.constant 0 : i32
    return %c0_i32, %c0_i32_0, %c0_i32_1 : i32, i32, i32
  }
  func.func @transform_2(%arg0: i32) -> (i32, i32) {
    %c0_i32 = arith.constant 0 : i32
    %c0_i32_0 = arith.constant 0 : i32
    %c0_i32_1 = arith.constant 0 : i32
    return %c0_i32, %c0_i32_0 : i32, i32
  }
  func.func @transform_3(%arg0: i32) -> (i32, i32) {
    %c0_i32 = arith.constant 0 : i32
    %c0_i32_0 = arith.constant 0 : i32
    return %arg0, %c0_i32 : i32, i32
  }
}

</mosaic_0001>

<bundles_post_ra>
// kernel: dqn_forward.1
= control target key start
LH: loop header
LB: loop body
LE: loop exit
PB: predicated region body
PF: predicated region fallthrough
CT: control target
= control target key end

     0   :  { %8 = vsyncpa [#allocation3], 0  ;;  %s531_s12 = smov [#allocation2]   ;;  %s607_s0 = inlined_call_operand.vmem [shape: bf16[8,128], index: 0, kind: input, shape index: {}]   ;;  %s608_s1 = inlined_call_operand.hbm [shape: bf16[3,128,128], index: 1, kind: input, shape index: {}]   ;;  %s609_s2 = inlined_call_operand.vmem [shape: f32[3,128], index: 2, kind: input, shape index: {}]   ;;  %s610_s3 = inlined_call_operand.vmem [shape: f32[8,128], index: 3, kind: output, shape index: {}]  }
   0x1   :  { %s16_s13 = sshll.u32 %s531_s12, 4  ;;  %s507_s16 = scalar_lea.hbm %s608_s1, 3072  ;;  %s17_s13 = int_to_ptr.vmem [resolvable:$true] %s16_s13 }
   0x2   :  { %p508_p0 = scmp.ne.s32.totalorder %s608_s1, %s507_s16  ;;  %p511_p1 = scmp.lt.u32.totalorder %s507_s16, %s608_s1 }
   0x4   :  { %p513_p2 = pnand %p511_p1, %p508_p0 }
   0x6   :  { %516 = shalt.err (!%p513_p2)
}
   0x7   :  { %s517_s21 = scalar_lea.vmem %s17_s13, 3072  ;;  %p522_p4 = scmp.lt.s32.totalorder %s17_s13, %s17_s13 }
   0x8   :  { %p518_p3 = scmp.ne.s32.totalorder %s17_s13, %s517_s21  ;;  %p523_p5 = scmp.lt.s32.totalorder %s517_s21, %s517_s21 }
   0xa   :  { %p524_p6 = por %p523_p5, %p522_p4 }
   0xc   :  { %p525_p7 = pnand %p524_p6, %p518_p3 }
   0xe   :  { %528 = shalt.err (!%p525_p7)
}
   0xf   :  { %s532_s22 = smov 64   ;;  %s533_s23 = smov 4  }
  0x10   :  { %22 = dma.hbm_to_vmem [thread:$0]  %s608_s1, 3072, %s17_s13, [#allocation3], %s532_s22, %s532_s22, %s533_s23  }
  0x11   :  { %529 = dma.done.wait [#allocation3], 3072  }
  0x12   :  { %530 = vsyncadd [#allocation3], 4294964224  ;;  %v534_v0 = vmov 0.0   ;;  %vm535_vm0 = vmmov 0   ;;  %v483_v1 = vld [vmem:[#allocation2] sm:$0xff]   ;;  %v484_v2 = vld [vmem:[#allocation2 + $0x8] sm:$0xff]   ;;  %v47_v24 = vlaneseq }
  0x13   :  { %418 = vmatprep.subr.bf16.mxu0 %v534_v0  ;;  %434 = vmatprep.mubr.msk.bf16.mxu0 %vm535_vm0, %v534_v0  ;;  %v485_v3 = vld [vmem:[#allocation2 + $0x10] sm:$0xff]   ;;  %v491_v4 = vld [vmem:[#allocation2 + $0x40] sm:$0xff]   ;;  %v486_v5 = vld [vmem:[#allocation2 + $0x18] sm:$0xff]  }
  0x14   :  { %438 = vmatprep.subr.bf16.mxu1 %v534_v0  ;;  %454 = vmatprep.mubr.msk.bf16.mxu1 %vm535_vm0, %v534_v0  ;;  %v492_v6 = vld [vmem:[#allocation2 + $0x48] sm:$0xff]   ;;  %v487_v7 = vld [vmem:[#allocation2 + $0x20] sm:$0xff]   ;;  %v493_v8 = vld [vmem:[#allocation2 + $0x50] sm:$0xff]   ;;  %v48_v25 = vshrl.u32 %v47_v24, 7 }
  0x15   :  { %419 = vmatpush3.bf16.msra.mxu0 %v483_v1  ;;  %439 = vmatpush3.bf16.msra.mxu1 %v491_v4  ;;  %v488_v9 = vld [vmem:[#allocation2 + $0x28] sm:$0xff]   ;;  %v494_v10 = vld [vmem:[#allocation2 + $0x58] sm:$0xff]   ;;  %v489_v11 = vld [vmem:[#allocation2 + $0x30] sm:$0xff]  }
  0x16   :  { %420 = vmatprep.subr.bf16.mxu0 %v534_v0  ;;  %440 = vmatprep.subr.bf16.mxu1 %v534_v0  ;;  %v495_v12 = vld [vmem:[#allocation2 + $0x60] sm:$0xff]   ;;  %v490_v13 = vld [vmem:[#allocation2 + $0x38] sm:$0xff]   ;;  %v496_v14 = vld [vmem:[#allocation2 + $0x68] sm:$0xff]   ;;  %v49_v26 = vsub.s32 0, %v48_v25  ;;  %v160_v38 = vsub.s32 1, %v48_v25  ;;  %v271_v47 = vsub.s32 2, %v48_v25 }
  0x17   :  { %v30_v15 = vld [vmem:[%s607_s0] sm:$0xf]  ;;  %v497_v16 = vld [vmem:[#allocation2 + $0x70] sm:$0xff]   ;;  %v498_v17 = vld [vmem:[#allocation2 + $0x78] sm:$0xff]  }
  0x18   :  { %v499_v18 = vld [vmem:[#allocation2 + $0x80] sm:$0xff]   ;;  %v500_v19 = vld [vmem:[#allocation2 + $0x88] sm:$0xff]   ;;  %v501_v20 = vld [vmem:[#allocation2 + $0x90] sm:$0xff]  }
  0x19   :  { %421 = vmatpush3.bf16.msra.mxu0 %v484_v2  ;;  %441 = vmatpush3.bf16.msra.mxu1 %v492_v6  ;;  %v502_v21 = vld [vmem:[#allocation2 + $0x98] sm:$0xff]   ;;  %v503_v22 = vld [vmem:[#allocation2 + $0xa0] sm:$0xff]   ;;  %v504_v23 = vld [vmem:[#allocation2 + $0xa8] sm:$0xff]  }
  0x1a   :  { %422 = vmatprep.subr.bf16.mxu0 %v534_v0  ;;  %442 = vmatprep.subr.bf16.mxu1 %v534_v0  ;;  %v29_v27 = vld [vmem:[%s609_s2] sm:$0x7]  ;;  %v505_v36 = vld [vmem:[#allocation2 + $0xb0] sm:$0xff]   ;;  %v506_v37 = vld [vmem:[#allocation2 + $0xb8] sm:$0xff]  }
  0x1b   :  { %v50_v28 = vrot.slane %v29_v27, %v49_v26  ;;  %v161_v39 = vrot.slane %v29_v27, %v160_v38  ;;  %v272_v48 = vrot.slane %v29_v27, %v271_v47 }
  0x1d   :  { %423 = vmatpush3.bf16.msra.mxu0 %v485_v3  ;;  %443 = vmatpush3.bf16.msra.mxu1 %v493_v8 }
  0x1e   :  { %424 = vmatprep.subr.bf16.mxu0 %v534_v0  ;;  %444 = vmatprep.subr.bf16.mxu1 %v534_v0 }
  0x21   :  { %425 = vmatpush3.bf16.msra.mxu0 %v486_v5  ;;  %445 = vmatpush3.bf16.msra.mxu1 %v494_v10 }
  0x22   :  { %426 = vmatprep.subr.bf16.mxu0 %v534_v0  ;;  %446 = vmatprep.subr.bf16.mxu1 %v534_v0 }
  0x25   :  { %427 = vmatpush3.bf16.msra.mxu0 %v487_v7  ;;  %447 = vmatpush3.bf16.msra.mxu1 %v495_v12 }
  0x26   :  { %428 = vmatprep.subr.bf16.mxu0 %v534_v0  ;;  %448 = vmatprep.subr.bf16.mxu1 %v534_v0 }
  0x29   :  { %429 = vmatpush3.bf16.msra.mxu0 %v488_v9  ;;  %449 = vmatpush3.bf16.msra.mxu1 %v496_v14 }
  0x2a   :  { %430 = vmatprep.subr.bf16.mxu0 %v534_v0  ;;  %450 = vmatprep.subr.bf16.mxu1 %v534_v0 }
  0x2d   :  { %431 = vmatpush3.bf16.msra.mxu0 %v489_v11  ;;  %451 = vmatpush3.bf16.msra.mxu1 %v497_v16 }
  0x2e   :  { %432 = vmatprep.subr.bf16.mxu0 %v534_v0  ;;  %452 = vmatprep.subr.bf16.mxu1 %v534_v0 }
  0x31   :  { %433 = vmatpush3.bf16.msra.mxu0 %v490_v13  ;;  %453 = vmatpush3.bf16.msra.mxu1 %v498_v17 }
  0x32   :  { %458 = vmatprep.subr.bf16.mxu0 %v534_v0 }
  0x34   :  { %435 = vmatmul.mubr.bf16.vlgmr.msra.gmra.mrb[0].mxu0 %v30_v15 }
  0x35   :  { %474 = vmatprep.mubr.msk.bf16.mxu0 %vm535_vm0, %v534_v0  ;;  %459 = vmatpush3.bf16.msra.mxu0 %v499_v18 }
  0x36   :  { %460 = vmatprep.subr.bf16.mxu0 %v534_v0 }
  0x39   :  { %461 = vmatpush3.bf16.msra.mxu0 %v500_v19 }
  0x3a   :  { %462 = vmatprep.subr.bf16.mxu0 %v534_v0 }
  0x3d   :  { %463 = vmatpush3.bf16.msra.mxu0 %v501_v20 }
  0x3e   :  { %464 = vmatprep.subr.bf16.mxu0 %v534_v0 }
  0x41   :  { %465 = vmatpush3.bf16.msra.mxu0 %v502_v21 }
  0x42   :  { %466 = vmatprep.subr.bf16.mxu0 %v534_v0 }
  0x45   :  { %467 = vmatpush3.bf16.msra.mxu0 %v503_v22 }
  0x46   :  { %468 = vmatprep.subr.bf16.mxu0 %v534_v0 }
  0x49   :  { %469 = vmatpush3.bf16.msra.mxu0 %v504_v23 }
  0x4a   :  { %470 = vmatprep.subr.bf16.mxu0 %v534_v0 }
  0x4d   :  { %471 = vmatpush3.bf16.msra.mxu0 %v505_v36 }
  0x4e   :  { %472 = vmatprep.subr.bf16.mxu0 %v534_v0 }
  0x51   :  { %473 = vmatpush3.bf16.msra.mxu0 %v506_v37 }
 0x107   :  { %v133_v29 = vpop.f32.mrb[0].mxu0 }
 0x108   :  { %v134_v30 = vadd.f32 %v133_v29, %v50_v28  ;;  %v436_v31 = vpop.f32.mrb[1].mxu0 }
 0x109   :  { %v136_v32 = vpop.f32.mrb[2].mxu0 }
 0x10a   :  { %v139_v33 = vmax.f32 %v134_v30, 0.0  ;;  %v437_v34 = vpop.f32.mrb[3].mxu0 }
 0x10c   :  { %v140_v35 = vpack.c.bf16 %v139_v33, %v139_v33 }
 0x10e   :  { %455 = vmatmul.mubr.bf16.vlgmr.msra.gmra.mrb[0].mxu1 %v140_v35 }
 0x1e1   :  { %v244_v40 = vpop.f32.mrb[0].mxu1 }
 0x1e2   :  { %v245_v41 = vadd.f32 %v244_v40, %v161_v39  ;;  %v456_v42 = vpop.f32.mrb[1].mxu1 }
 0x1e3   :  { %v247_v43 = vpop.f32.mrb[2].mxu1 }
 0x1e4   :  { %v250_v44 = vmax.f32 %v245_v41, 0.0  ;;  %v457_v45 = vpop.f32.mrb[3].mxu1 }
 0x1e6   :  { %v251_v46 = vpack.c.bf16 %v250_v44, %v250_v44 }
 0x1e8   :  { %475 = vmatmul.mubr.bf16.vlgmr.msra.gmra.mrb[4].mxu0 %v251_v46 }
 0x2bb   :  { %v355_v49 = vpop.f32.mrb[4].mxu0 }
 0x2bc   :  { %v356_v50 = vadd.f32 %v355_v49, %v272_v48  ;;  %v476_v51 = vpop.f32.mrb[5].mxu0 }
 0x2bd   :  { %v358_v52 = vpop.f32.mrb[6].mxu0 }
 0x2be   :  { %361 = vst [vmem:[%s610_s3] sm:$0xff] %v356_v50  ;;  %v477_v53 = vpop.f32.mrb[7].mxu0 }
 0x2bf   :  { %366 = vsyncpa [#allocation3], 1 }

</bundles_post_ra>
